<compile_context>
chip_gen: v5e
topology: v5e:2x2
jax: 0.10.0
libtpu: 0.0.40
codegen_flags: <defaults>
</compile_context>

<pallas_src>
import functools
import math

import jax
import jax.numpy as jnp
from jax.experimental import pallas as pl
from jax.experimental.pallas import tpu as pltpu


def _label_smoothing_kernel(pred_ref, tgt_ref, cid_ref, out_ref, *,
                            pad_idx, neg_conf, neg_base, n_rows,
                            tile_n, tile_v, rps, has_row_tail):
    c = pl.program_id(0)   # row slice ("parallel" -> other TensorCore on v7x)
    i = pl.program_id(1)   # row tile within the slice
    j = pl.program_id(2)   # vocab tile

    # First visit of this slice's resident output block: zero the accumulator.
    @pl.when(jnp.logical_and(i == 0, j == 0))
    def _():
        out_ref[...] = jnp.zeros_like(out_ref)

    t = tgt_ref[...]                       # (tile_n, 1) int32
    cid = cid_ref[...]                     # (1, tile_v) int32; -1 = pad col / padded tail

    # Row mask: non-pad target rows (+ real rows only, on the partial tail tile).
    active_row = t != pad_idx              # (tile_n, 1)
    if has_row_tail:
        row0 = (c * rps + i) * tile_n
        rid = row0 + jax.lax.broadcasted_iota(jnp.int32, (tile_n, 1), 0)
        active_row = jnp.logical_and(active_row, rid < n_rows)

    # Single full-tile mask handles pad-target rows, tail rows, the pad column
    # and padded tail columns at once; the select also discards any NaN/Inf
    # coming from log of garbage in partially-DMA'd boundary blocks.
    mask = jnp.logical_and(active_row, cid >= 0)          # (tile_n, tile_v)

    logp = jnp.log(pred_ref[...].astype(jnp.float32))     # EUP; widen in-register
    logp = jnp.where(mask, logp, 0.0)

    # w = -(smoothed target-distribution value); scalar select operands.
    w = jnp.where(cid == t, jnp.float32(neg_conf), jnp.float32(neg_base))

    contrib = w * logp                                     # = -(dist * log(pred))

    # Sublane-aligned partial reduction (plain VPU adds, lane-dense store)
    # into the resident (1, 8, tile_v) f32 output block.
    out_ref[...] += contrib.reshape(tile_n // 8, 8, tile_v).sum(
        axis=0, keepdims=True)


def label_smoothing_loss(pred, target, *, smoothing, pad_idx,
                         tile_n=None, tile_v=None, num_slices=2,
                         target_block_bytes=6 * 1024 * 1024):
    """pred: (B, S, V) probabilities (f32 or bf16). target: (B, S) int labels."""
    B, S, V = pred.shape
    assert V > 2, "label smoothing requires V > 2"
    assert 0 <= pad_idx < V
    N = B * S

    pred2 = pred.reshape(N, V)                 # keep dtype; widened in-kernel
    tgt2 = target.reshape(N, 1).astype(jnp.int32)
    itemsize = jnp.dtype(pred2.dtype).itemsize

    # ---- vocab tiling: always divides V (or equals V) -> no column-tail logic
    if tile_v is None:
        slab_bytes = 8 * V * itemsize
        if V % 128 != 0 or slab_bytes <= 2 * 1024 * 1024:
            tile_v = V                          # single j step, no tail
        else:
            # largest multiple-of-128 divisor of V whose 8-row slab fits ~2 MiB
            max_cols = max(128, (2 * 1024 * 1024) // (8 * itemsize))
            m = V // 128
            best = 1
            for d in range(1, m + 1):
                if m % d == 0 and 128 * d <= max_cols:
                    best = d
            tile_v = 128 * best
    tile_v = int(tile_v)
    assert tile_v == V or tile_v % 128 == 0
    n_v_tiles = int(pl.cdiv(V, tile_v))
    V_pad = n_v_tiles * tile_v

    # ---- row tiling: ~target_block_bytes of pred per grid step --------------
    max_tile_n = max(8, (N // 8) * 8)           # keep block rows <= array rows
    if tile_n is None:
        tile_n = target_block_bytes // (itemsize * tile_v)
    tile_n = max(8, min(int(tile_n), max_tile_n))
    tile_n -= tile_n % 8
    n_row_tiles = int(pl.cdiv(N, tile_n))

    # ---- balanced row slices (one per TensorCore on v7x; harmless elsewhere) -
    num_slices = max(1, min(int(num_slices), n_row_tiles))
    if num_slices > 1 and n_row_tiles % num_slices != 0:
        found = None
        upper = min(max_tile_n, (tile_n * 4) // 3)
        for cand in range(tile_n + 8, upper + 1, 8):         # prefer bigger blocks
            if int(pl.cdiv(N, cand)) % num_slices == 0:
                found = cand
                break
        if found is None:
            for cand in range(tile_n - 8, 7, -8):
                if int(pl.cdiv(N, cand)) % num_slices == 0:
                    found = cand
                    break
        if found is not None:
            tile_n = found
            n_row_tiles = int(pl.cdiv(N, tile_n))
        else:
            num_slices_ = num_slices
            while n_row_tiles % num_slices_ != 0:
                num_slices_ -= 1
            num_slices = num_slices_
    rps = n_row_tiles // num_slices             # row tiles per slice (exact, no overhang)
    has_row_tail = (N % tile_n) != 0

    # Precomputed column-id row: -1 at the pad column and in any padded tail,
    # so pad/tail masking costs zero extra per-element VALU ops in the kernel.
    cid = jnp.arange(V, dtype=jnp.int32).at[pad_idx].set(-1)
    if V_pad != V:
        cid = jnp.concatenate([cid, jnp.full((V_pad - V,), -1, jnp.int32)])
    cid = cid.reshape(1, V_pad)

    kernel = functools.partial(
        _label_smoothing_kernel,
        pad_idx=int(pad_idx),
        neg_conf=-(1.0 - float(smoothing)),
        neg_base=-(float(smoothing) / (V - 2)),
        n_rows=int(N), tile_n=int(tile_n), tile_v=int(tile_v),
        rps=int(rps), has_row_tail=bool(has_row_tail))

    out = pl.pallas_call(
        kernel,
        out_shape=jax.ShapeDtypeStruct((num_slices, 8, tile_v), jnp.float32),
        grid_spec=pltpu.PrefetchScalarGridSpec(
            num_scalar_prefetch=0,
            grid=(num_slices, rps, n_v_tiles),
            in_specs=[
                pl.BlockSpec((tile_n, tile_v), lambda c, i, j: (c * rps + i, j)),
                pl.BlockSpec((tile_n, 1), lambda c, i, j: (c * rps + i, 0)),
                pl.BlockSpec((1, tile_v), lambda c, i, j: (0, j)),
            ],
            out_specs=pl.BlockSpec((1, 8, tile_v), lambda c, i, j: (c, 0, 0)),
        ),
        compiler_params=pltpu.CompilerParams(
            dimension_semantics=("parallel", "arbitrary", "arbitrary"),
            # 2x 6-8 MiB pred blocks + resident outputs stay well under this;
            # also safe vs v7x's 64 MiB physical VMEM (review: cap <= ~48 MiB).
            vmem_limit_bytes=32 * 1024 * 1024),
    )(pred2, tgt2, cid)

    # Per-non-pad-row constant  C = sum_j dist*log(dist)  (xlogy convention),
    # hoisted entirely out of the kernel's element path.
    const_c = 0.0
    if 1.0 - smoothing > 0.0:
        const_c += (1.0 - smoothing) * math.log(1.0 - smoothing)
    if smoothing > 0.0:
        const_c += smoothing * math.log(smoothing / (V - 2))
    n_active = jnp.sum((target.reshape(-1) != pad_idx).astype(jnp.float32))

    return jnp.sum(out) + jnp.float32(const_c) * n_active


def _reference_loss(pred, target, smoothing, pad_idx):
    B, S, V = pred.shape
    p = pred.reshape(-1, V).astype(jnp.float32)
    t = target.reshape(-1)
    dist = jnp.full_like(p, smoothing / (V - 2))
    dist = dist.at[jnp.arange(p.shape[0]), t].set(1.0 - smoothing)
    dist = dist.at[:, pad_idx].set(0.0)
    dist = jnp.where((t == pad_idx)[:, None], 0.0, dist)
    term = jnp.where(dist > 0,
                     dist * (jnp.log(jnp.where(dist > 0, dist, 1.0)) - jnp.log(p)),
                     0.0)
    return jnp.sum(term)


if __name__ == "__main__":
    root = jax.random.PRNGKey(0)

    def run_case(case_id, B, S, V, smoothing, pad_idx, dtype=jnp.float32, **kw):
        k1, k2 = jax.random.split(jax.random.fold_in(root, case_id))
        logits = jax.random.normal(k1, (B, S, V), dtype=jnp.float32)
        pred = jax.nn.softmax(logits, axis=-1).astype(dtype)   # module expects probabilities
        target = jax.random.randint(k2, (B, S), 0, V, dtype=jnp.int32)
        # force a couple of pad positions to exercise the pad-row masking path
        target = target.at[0, 0].set(pad_idx).at[1, min(3, S - 1)].set(pad_idx)

        loss = label_smoothing_loss(pred, target,
                                    smoothing=smoothing, pad_idx=pad_idx, **kw)
        loss = jax.block_until_ready(loss)
        ref = _reference_loss(pred, target, smoothing, pad_idx)
        assert jnp.allclose(loss, ref, rtol=1e-5, atol=2e-3), (case_id, float(loss), float(ref))

    # Small natural config: one block, tile_v == V, no tails.
    run_case(0, 2, 8, 128, 0.1, 0)
    # Stress the tiling paths: partial tail row tile (N=26, 26%8=2), two
    # balanced row slices, vocab split across two 128-lane tiles, pad_idx != 0.
    run_case(1, 2, 13, 256, 0.1, 3, tile_n=8, tile_v=128, num_slices=2)
    # Vocab not a multiple of 128 (tile_v == V fallback), bf16 in-kernel
    # widening, and a row tail inside a single row tile.
    run_case(2, 2, 9, 130, 0.1, 5, dtype=jnp.bfloat16)

    print("KERNEL_OK")
</pallas_src>

<mosaic_0001>
module attributes {stable_mosaic.version = 11 : i64} {
  func.func @_label_smoothing_kernel(%arg0: i32, %arg1: i32, %arg2: i32, %arg3: memref<16x128xf32, #tpu.memory_space<vmem>>, %arg4: memref<16x1xi32, #tpu.memory_space<vmem>>, %arg5: memref<1x128xi32, #tpu.memory_space<vmem>>, %arg6: memref<1x8x128xf32, #tpu.memory_space<vmem>>) attributes {dimension_semantics = [#tpu.dimension_semantics<parallel>, #tpu.dimension_semantics<arbitrary>, #tpu.dimension_semantics<arbitrary>], iteration_bounds = array<i64: 1, 1, 1>, scalar_prefetch = 0 : i64, scratch_operands = 0 : i64, tpu.core_type = #tpu.core_type<tc>, window_params = [{transform_indices = @transform_0, window_bounds = array<i64: 16, 128>}, {transform_indices = @transform_1, window_bounds = array<i64: 16, 1>}, {transform_indices = @transform_2, window_bounds = array<i64: 1, 128>}, {transform_indices = @transform_3, window_bounds = array<i64: 1, 8, 128>}]} {
    %c0_i32 = arith.constant 0 : i32
    %0 = arith.cmpi eq, %arg1, %c0_i32 : i32
    %c0_i32_0 = arith.constant 0 : i32
    %1 = arith.cmpi eq, %arg2, %c0_i32_0 : i32
    %2 = arith.andi %0, %1 : i1
    %3 = arith.extui %2 : i1 to i32
    %c0_i32_1 = arith.constant 0 : i32
    %4 = arith.cmpi ne, %3, %c0_i32_1 : i32
    scf.if %4 {
      %cst_18 = arith.constant 0.000000e+00 : f32
      %31 = vector.broadcast %cst_18 : f32 to vector<1x8x128xf32>
      %c0_19 = arith.constant 0 : index
      %c0_20 = arith.constant 0 : index
      %c0_21 = arith.constant 0 : index
      %32 = vector.load %arg6[%c0_19, %c0_20, %c0_21] : memref<1x8x128xf32, #tpu.memory_space<vmem>>, vector<1x8x128xf32>
      tpu.vector_store %arg6[%c0_19, %c0_20, %c0_21], %31 {strides = array<i32>} : memref<1x8x128xf32, #tpu.memory_space<vmem>>, vector<1x8x128xf32>,
    } else {
    }
    %c0 = arith.constant 0 : index
    %c0_2 = arith.constant 0 : index
    %5 = vector.load %arg4[%c0, %c0_2] : memref<16x1xi32, #tpu.memory_space<vmem>>, vector<16x1xi32>
    %c0_3 = arith.constant 0 : index
    %c0_4 = arith.constant 0 : index
    %6 = vector.load %arg5[%c0_3, %c0_4] : memref<1x128xi32, #tpu.memory_space<vmem>>, vector<1x128xi32>
    %c0_i32_5 = arith.constant 0 : i32
    %7 = vector.broadcast %c0_i32_5 : i32 to vector<16x1xi32>
    %8 = arith.cmpi ne, %5, %7 : vector<16x1xi32>
    %c0_i32_6 = arith.constant 0 : i32
    %9 = vector.broadcast %c0_i32_6 : i32 to vector<1x128xi32>
    %10 = arith.cmpi sge, %6, %9 : vector<1x128xi32>
    %11 = vector.broadcast %8 : vector<16x1xi1> to vector<16x128xi1>
    %12 = vector.broadcast %10 : vector<1x128xi1> to vector<16x128xi1>
    %13 = arith.andi %11, %12 : vector<16x128xi1>
    %c0_7 = arith.constant 0 : index
    %c0_8 = arith.constant 0 : index
    %14 = vector.load %arg3[%c0_7, %c0_8] : memref<16x128xf32, #tpu.memory_space<vmem>>, vector<16x128xf32>
    %15 = math.log %14 : vector<16x128xf32>
    %cst = arith.constant 0.000000e+00 : f32
    %16 = vector.broadcast %cst : f32 to vector<16x128xf32>
    %17 = arith.select %13, %15, %16 : vector<16x128xi1>, vector<16x128xf32>
    %18 = vector.broadcast %6 : vector<1x128xi32> to vector<16x128xi32>
    %19 = vector.broadcast %5 : vector<16x1xi32> to vector<16x128xi32>
    %20 = arith.cmpi eq, %18, %19 : vector<16x128xi32>
    %cst_9 = arith.constant -0.899999976 : f32
    %cst_10 = arith.constant -7.93650805E-4 : f32
    %21 = vector.broadcast %cst_9 : f32 to vector<16x128xf32>
    %22 = vector.broadcast %cst_10 : f32 to vector<16x128xf32>
    %23 = arith.select %20, %21, %22 : vector<16x128xi1>, vector<16x128xf32>
    %24 = arith.mulf %23, %17 : vector<16x128xf32>
    %c0_11 = arith.constant 0 : index
    %c0_12 = arith.constant 0 : index
    %c0_13 = arith.constant 0 : index
    %25 = vector.load %arg6[%c0_11, %c0_12, %c0_13] : memref<1x8x128xf32, #tpu.memory_space<vmem>>, vector<1x8x128xf32>
    %26 = vector.shape_cast %24 : vector<16x128xf32> to vector<2x8x128xf32>
    %cst_14 = arith.constant dense<0.000000e+00> : vector<8x128xf32>
    %27 = vector.multi_reduction <add>, %26, %cst_14 [0] : vector<2x8x128xf32> to vector<8x128xf32>
    %28 = vector.shape_cast %27 : vector<8x128xf32> to vector<1x8x128xf32>
    %29 = arith.addf %25, %28 : vector<1x8x128xf32>
    %c0_15 = arith.constant 0 : index
    %c0_16 = arith.constant 0 : index
    %c0_17 = arith.constant 0 : index
    %30 = vector.load %arg6[%c0_15, %c0_16, %c0_17] : memref<1x8x128xf32, #tpu.memory_space<vmem>>, vector<1x8x128xf32>
    tpu.vector_store %arg6[%c0_15, %c0_16, %c0_17], %29 {strides = array<i32>} : memref<1x8x128xf32, #tpu.memory_space<vmem>>, vector<1x8x128xf32>,
    return
  }
  func.func @transform_0(%arg0: i32, %arg1: i32, %arg2: i32) -> (i32, i32) {
    %c1_i32 = arith.constant 1 : i32
    %0 = arith.muli %arg0, %c1_i32 : i32
    %1 = arith.addi %0, %arg1 : i32
    %c0_i32 = arith.constant 0 : i32
    return %1, %arg2 : i32, i32
  }
  func.func @transform_1(%arg0: i32, %arg1: i32, %arg2: i32) -> (i32, i32) {
    %c1_i32 = arith.constant 1 : i32
    %0 = arith.muli %arg0, %c1_i32 : i32
    %1 = arith.addi %0, %arg1 : i32
    %c0_i32 = arith.constant 0 : i32
    %c0_i32_0 = arith.constant 0 : i32
    return %1, %c0_i32 : i32, i32
  }
  func.func @transform_2(%arg0: i32, %arg1: i32, %arg2: i32) -> (i32, i32) {
    %c0_i32 = arith.constant 0 : i32
    %c0_i32_0 = arith.constant 0 : i32
    return %c0_i32, %arg2 : i32, i32
  }
  func.func @transform_3(%arg0: i32, %arg1: i32, %arg2: i32) -> (i32, i32, i32) {
    %c0_i32 = arith.constant 0 : i32
    %c0_i32_0 = arith.constant 0 : i32
    %c0_i32_1 = arith.constant 0 : i32
    return %arg0, %c0_i32, %c0_i32_0 : i32, i32, i32
  }
}

</mosaic_0001>

<bundles_post_ra>
// kernel: tpu_custom_call.1
= control target key start
LH: loop header
LB: loop body
LE: loop exit
PB: predicated region body
PF: predicated region fallthrough
CT: control target
= control target key end

     0   :  { %v177_v1 = vmov 0   ;;  %s221_s0 = inlined_call_operand.vmem [shape: f32[16,128], index: 0, kind: input, shape index: {}]   ;;  %s222_s1 = inlined_call_operand.vmem [shape: s32[16,1], index: 1, kind: input, shape index: {}]   ;;  %s223_s2 = inlined_call_operand.vmem [shape: s32[1,128], index: 2, kind: input, shape index: {}]   ;;  %s224_s3 = inlined_call_operand.hbm [shape: f32[1,8,128], index: 3, kind: output, shape index: {}]  }
   0x1   :  { %v66_v0 = vld [vmem:[%s222_s1] sm:$0xff]  ;;  %145 = vset.pattern.permute.xlu1 %v177_v1  ;;  %144 = vset.pattern.permute.xlu0 %v177_v1  ;;  %v67_v3 = vld [vmem:[%s222_s1 + $0x8] sm:$0xff] }
   0x2   :  { %vm69_vm0 = vcmp.ne.s32.totalorder %v66_v0, 0  ;;  %97 = vperm.xlu1 %145, %v66_v0  }
   0x3   :  { %v72_v2 = vsel %vm69_vm0, 1, %v177_v1 }
   0x4   :  { %8 = vsyncpa [#allocation3], 0  ;;  %75 = vperm.xlu0 %144, %v72_v2   ;;  %vm70_vm1 = vcmp.ne.s32.totalorder %v67_v3, 0  ;;  %v68_v5 = vld [vmem:[%s223_s2] sm:$0x1]  ;;  %v88_v7 = vld [vmem:[%s221_s0 + $0x8] sm:$0xff] }
   0x5   :  { %v73_v4 = vsel %vm70_vm1, 1, %v177_v1  ;;  %vm71_vm2 = vcmp.ge.s32.totalorder %v68_v5, 0  ;;  %v87_v6 = vld [vmem:[%s221_s0] sm:$0xff]  ;;  %v178_v19 = vmov -0.0007936508   ;;  %s179_s0 = smov [#allocation2]  }
   0x6   :  { %v82_v8 = vsel %vm71_vm2, 1, %v177_v1  ;;  %147 = vlog2.f32 %v87_v6  ;;  %v146_v13 = vld [vmem:[%s223_s2] ss:$0 sm:$0xff]  ;;  %s117_s2 = sshll.u32 %s179_s0, 4  ;;  %s119_s25 = sshll.u32 %s224_s3, 4  ;;  %s118_s2 = int_to_ptr.vmem [resolvable:$true] %s117_s2  ;;  %s120_s25 = int_to_ptr.hbm [resolvable:$true] %s119_s25 }
   0x7   :  { %149 = vlog2.f32 %v88_v7  ;;  %v83_v10 = vperm.slane %v82_v8, 0 }
   0x9   :  { %vm84_vm3 = vcmp.eq.s32.totalorder %v83_v10, 1 }
   0xa   :  { %100 = vperm.xlu1 %145, %v67_v3  }
   0xc   :  { %78 = vperm.xlu0 %144, %v73_v4   ;;  %v148_v12 = vpop.eup %147 }
   0xd   :  { %v150_v14 = vpop.eup %149  ;;  %v90_v15 = vmul.f32 0.6931472, %v148_v12 }
   0xe   :  { %v92_v17 = vmul.f32 0.6931472, %v150_v14 }
  0x74   :  { %v98_v9 = vpop.permute.xlu1 %97 }
  0x75   :  { %vm102_vm5 = vcmp.eq.s32.totalorder %v146_v13, %v98_v9 }
  0x76   :  { %v76_v11 = vpop.permute.xlu0 %75  ;;  %v104_v20 = vsel %vm102_vm5, -0.9, %v178_v19 }
  0x77   :  { %vm80_vm4 = vcmp.eq.s32.totalorder %v76_v11, 1 }
  0x78   :  { %vm85_vm6 = vmand %vm80_vm4, %vm84_vm3 }
  0x79   :  { %v93_v21 = vsel %vm85_vm6, %v90_v15, 0.0 }
  0x7a   :  { %v106_v24 = vmul.f32 %v104_v20, %v93_v21 }
  0x7c   :  { %v101_v16 = vpop.permute.xlu1 %100 }
  0x7d   :  { %vm103_vm7 = vcmp.eq.s32.totalorder %v146_v13, %v101_v16 }
  0x7e   :  { %v79_v18 = vpop.permute.xlu0 %78  ;;  %v105_v22 = vsel %vm103_vm7, -0.9, %v178_v19 }
  0x7f   :  { %vm81_vm8 = vcmp.eq.s32.totalorder %v79_v18, 1 }
  0x80   :  { %vm86_vm9 = vmand %vm81_vm8, %vm84_vm3 }
  0x81   :  { %v94_v23 = vsel %vm86_vm9, %v92_v17, 0.0 }
  0x82   :  { %v107_v25 = vmul.f32 %v105_v22, %v94_v23 }
  0x84   :  { %v109_v26 = vadd.f32 %v107_v25, %v106_v24 }
  0x86   :  { %111 = vst [vmem:[#allocation2] sm:$0xff] %v109_v26 }
  0x87   :  { %122 = dma.vmem_to_hbm [thread:$0]  %s118_s2, 128, %s120_s25, [#allocation3]  }
  0x88   :  { %175 = dma.done.wait [#allocation3], 128  }
  0x89   :  { %176 = vsyncadd [#allocation3], 4294967168 }
  0x8a   :  { %127 = vsyncpa [#allocation3], 1 }

</bundles_post_ra>
